<compile_context>
chip_gen: v6e
topology: v6e:2x2x1
jax: 0.10.0
libtpu: 0.0.40
codegen_flags: <defaults>
</compile_context>

<pallas_src>
from functools import partial

import jax
import jax.numpy as jnp
from jax.experimental import pallas as pl
from jax.experimental.pallas import tpu as pltpu


# --------------------------------------------------------------------------- kernel

def _conv_relu_kernel(x_ref, w_ref, b_ref, o_ref, *, n_blk, Cout, H, W, K, Hout):
    """Fused valid KxK conv + bias + ReLU for `n_blk` lane-concatenated sample-views.

    x_ref: (Cin, n_blk*H*W)   sample-views concatenated on the lane axis
    w_ref: (K*K, Cout, Cin)   per-tap weights, tap order (di, dj)
    b_ref: (Cout, 1)          bias
    o_ref: (n_blk, Cout, Hout*W)  valid conv rows (columns cropped by the wrapper)
    """
    HW = H * W
    HoutW = Hout * W
    L = n_blk * HW

    x = x_ref[...]                                      # (Cin, L), lanes dense
    # Bias folded into the accumulator init: one broadcast, hoisted out of the loop.
    acc = jnp.broadcast_to(b_ref[...], (Cout, L))

    # Nine accumulating depth-Cin MXU matmuls.  roll(x, L - s)[ci, p] == x[ci, p + s];
    # for every kept output position (r < Hout, c < Wout) p + s stays inside the same
    # sample-view slab, so wrapped garbage only lands on cropped positions.
    for di in range(K):
        for dj in range(K):
            s = di * W + dj
            tap = x if s == 0 else pltpu.roll(x, shift=L - s, axis=1)
            acc = acc + jnp.dot(w_ref[di * K + dj], tap,
                                preferred_element_type=jnp.float32)

    y = jnp.maximum(acc, 0.0)                           # (Cout, L)

    # Per-sample stores from 256-lane-aligned slices; only the valid rows
    # (first Hout*W lanes of each sample's padded grid) go back to HBM.
    for i in range(n_blk):
        o_ref[i] = y[:, i * HW: i * HW + HoutW]


# --------------------------------------------------------------------------- wrapper

def _num_tensorcores():
    """Best-effort TensorCore count of the local chip (1 on v5e/v6e, 2 on v7x)."""
    try:
        dev = jax.devices()[0]
        nc = getattr(dev, "num_cores", None)
        if nc is not None:
            return max(1, int(nc))
        if "v7" in str(getattr(dev, "device_kind", "")).lower():
            return 2
    except Exception:
        pass
    return 1


def _pick_grid(N, Cin, Cout, HW, HoutW):
    """Grid steps: 1 on single-TC chips, >=2 on multi-TC; cap n_blk for VMEM."""
    per_view_bytes = 4 * (Cin * HW + Cout * HoutW) * 2      # in+out blocks, double-buffered
    max_blk = max(1, (8 << 20) // per_view_bytes)            # stay well under scoped VMEM
    min_steps = 2 if _num_tensorcores() >= 2 else 1
    steps = 1
    while steps < N and (steps < min_steps or N % steps or (N // steps) > max_blk):
        steps += 1
    return steps, N // steps


def _encoder_pallas(x_slab, w_taps, b2, *, N, H, W, K):
    """x_slab: [Cin, N*H*W] -> [N, Cout, Hout*W] (conv + bias + ReLU, valid rows)."""
    Cin = x_slab.shape[0]
    Cout = w_taps.shape[1]
    HW = H * W
    Hout = H - K + 1
    HoutW = Hout * W

    n_steps, n_blk = _pick_grid(N, Cin, Cout, HW, HoutW)

    kernel = partial(_conv_relu_kernel,
                     n_blk=n_blk, Cout=Cout, H=H, W=W, K=K, Hout=Hout)

    return pl.pallas_call(
        kernel,
        out_shape=jax.ShapeDtypeStruct((N, Cout, HoutW), jnp.float32),
        grid_spec=pltpu.PrefetchScalarGridSpec(
            num_scalar_prefetch=0,
            grid=(n_steps,),
            in_specs=[
                pl.BlockSpec((Cin, n_blk * HW), lambda g: (0, g)),
                pl.BlockSpec((K * K, Cout, Cin), lambda g: (0, 0, 0)),
                pl.BlockSpec((Cout, 1), lambda g: (0, 0)),
            ],
            out_specs=pl.BlockSpec((n_blk, Cout, HoutW), lambda g: (g, 0, 0)),
        ),
        compiler_params=pltpu.CompilerParams(
            dimension_semantics=("parallel",)),
    )(x_slab, w_taps, b2)


def asym_view_pair_encoder(x, w_hwio, b):
    """Pallas implementation of AsymViewPairEncoder.forward.

    x:      [B, 2, Cin, H, W]  (NCHW per view, like the torch module)
    return: [B, 2*Cout, Hout, Wout]
    """
    B, V, Cin, H, W = x.shape
    assert V == 2
    K = w_hwio.shape[0]
    Cout = w_hwio.shape[-1]
    Hout, Wout = H - K + 1, W - K + 1
    N = B * V

    # Sample-views concatenated on the lane axis (Cin outermost): one tiny XLA
    # transpose of the input, so each grid step is one wide matmul per conv tap.
    x_slab = x.reshape(N, Cin, H * W).transpose(1, 0, 2).reshape(Cin, N * H * W)
    # Per-tap weights (K*K, Cout, Cin), tap order (di, dj).
    w_taps = jnp.transpose(w_hwio, (0, 1, 3, 2)).reshape(K * K, Cout, Cin)
    b2 = b.reshape(Cout, 1)

    y = _encoder_pallas(x_slab, w_taps, b2, N=N, H=H, W=W, K=K)   # (N, Cout, Hout*W)

    # Rows already cropped in-kernel; only the cheap column crop remains here.
    # Merging (view, Cout) via reshape reproduces torch.cat([y0, y1], dim=1).
    y = y.reshape(N, Cout, Hout, W)[..., :Wout]
    return y.reshape(B, V * Cout, Hout, Wout)


# --------------------------------------------------------------------------- reference

def _reference(x, w_hwio, b):
    """Pure-JAX reference (same semantics) for a correctness check."""
    B, V, Cin, H, W = x.shape
    x_flat = x.reshape(B * V, Cin, H, W)
    y = jax.lax.conv_general_dilated(
        x_flat, w_hwio, window_strides=(1, 1), padding="VALID",
        dimension_numbers=("NCHW", "HWIO", "NCHW"))
    y = jnp.maximum(y + b.reshape(1, -1, 1, 1), 0.0)
    Cout, Hout, Wout = y.shape[1], y.shape[2], y.shape[3]
    return y.reshape(B, V, Cout, Hout, Wout).reshape(B, V * Cout, Hout, Wout)


# --------------------------------------------------------------------------- main

if __name__ == "__main__":
    B, V, Cin, H, W = 2, 2, 4, 16, 16
    Cout, K = 8, 3

    key = jax.random.PRNGKey(0)
    kx, kw, kb = jax.random.split(key, 3)

    x = jax.random.normal(kx, (B, V, Cin, H, W), dtype=jnp.float32)
    w_hwio = jax.random.normal(kw, (K, K, Cin, Cout), dtype=jnp.float32) * 0.1
    b = jax.random.normal(kb, (Cout,), dtype=jnp.float32) * 0.01

    out = jax.block_until_ready(asym_view_pair_encoder(x, w_hwio, b))
    ref = _reference(x, w_hwio, b)

    assert out.shape == (B, V * Cout, H - K + 1, W - K + 1), out.shape
    assert jnp.allclose(out, ref, atol=1e-4, rtol=1e-4), \
        float(jnp.max(jnp.abs(out - ref)))

    print("KERNEL_OK")
</pallas_src>

<mosaic_0001>
module attributes {stable_mosaic.version = 11 : i64} {
  func.func @_conv_relu_kernel(%arg0: i32, %arg1: memref<4x1024xf32, #tpu.memory_space<vmem>>, %arg2: memref<9x8x4xf32, #tpu.memory_space<vmem>>, %arg3: memref<8x1xf32, #tpu.memory_space<vmem>>, %arg4: memref<4x8x224xf32, #tpu.memory_space<vmem>>) attributes {dimension_semantics = [#tpu.dimension_semantics<parallel>], iteration_bounds = array<i64: 1>, scalar_prefetch = 0 : i64, scratch_operands = 0 : i64, tpu.core_type = #tpu.core_type<tc>, window_params = [{transform_indices = @transform_0, window_bounds = array<i64: 4, 1024>}, {pipeline_mode = #tpu.pipeline_mode<synchronous>, transform_indices = @transform_1, window_bounds = array<i64: 9, 8, 4>}, {pipeline_mode = #tpu.pipeline_mode<synchronous>, transform_indices = @transform_2, window_bounds = array<i64: 8, 1>}, {transform_indices = @transform_3, window_bounds = array<i64: 4, 8, 224>}]} {
    %c0 = arith.constant 0 : index
    %c0_0 = arith.constant 0 : index
    %0 = vector.load %arg1[%c0, %c0_0] : memref<4x1024xf32, #tpu.memory_space<vmem>>, vector<4x1024xf32>
    %c0_1 = arith.constant 0 : index
    %c0_2 = arith.constant 0 : index
    %1 = vector.load %arg3[%c0_1, %c0_2] : memref<8x1xf32, #tpu.memory_space<vmem>>, vector<8x1xf32>
    %2 = vector.shape_cast %1 : vector<8x1xf32> to vector<8x1xf32>
    %3 = vector.broadcast %2 : vector<8x1xf32> to vector<8x1024xf32>
    %c0_3 = arith.constant 0 : index
    %c0_4 = arith.constant 0 : index
    %c0_5 = arith.constant 0 : index
    %4 = vector.load %arg2[%c0_3, %c0_4, %c0_5] : memref<9x8x4xf32, #tpu.memory_space<vmem>>, vector<1x8x4xf32>
    %5 = vector.shape_cast %4 : vector<1x8x4xf32> to vector<8x4xf32>
    %cst = arith.constant dense<0.000000e+00> : vector<8x1024xf32>
    %6 = tpu.matmul %5, %0, %cst {dimension_numbers = #tpu.dot_dimension_numbers<[1], [0], [0], [1], [0, 0, 1, 1], [], []>} : vector<8x4xf32>, vector<4x1024xf32>, vector<8x1024xf32> -> vector<8x1024xf32>
    %7 = arith.addf %3, %6 : vector<8x1024xf32>
    %c1023_i32 = arith.constant 1023 : i32
    %8 = tpu.dynamic_rotate %0 by %c1023_i32 dim 1 : vector<4x1024xf32>, i32 -> vector<4x1024xf32>
    %c1 = arith.constant 1 : index
    %c0_6 = arith.constant 0 : index
    %c0_7 = arith.constant 0 : index
    %9 = vector.load %arg2[%c1, %c0_6, %c0_7] : memref<9x8x4xf32, #tpu.memory_space<vmem>>, vector<1x8x4xf32>
    %10 = vector.shape_cast %9 : vector<1x8x4xf32> to vector<8x4xf32>
    %cst_8 = arith.constant dense<0.000000e+00> : vector<8x1024xf32>
    %11 = tpu.matmul %10, %8, %cst_8 {dimension_numbers = #tpu.dot_dimension_numbers<[1], [0], [0], [1], [0, 0, 1, 1], [], []>} : vector<8x4xf32>, vector<4x1024xf32>, vector<8x1024xf32> -> vector<8x1024xf32>
    %12 = arith.addf %7, %11 : vector<8x1024xf32>
    %c1022_i32 = arith.constant 1022 : i32
    %13 = tpu.dynamic_rotate %0 by %c1022_i32 dim 1 : vector<4x1024xf32>, i32 -> vector<4x1024xf32>
    %c2 = arith.constant 2 : index
    %c0_9 = arith.constant 0 : index
    %c0_10 = arith.constant 0 : index
    %14 = vector.load %arg2[%c2, %c0_9, %c0_10] : memref<9x8x4xf32, #tpu.memory_space<vmem>>, vector<1x8x4xf32>
    %15 = vector.shape_cast %14 : vector<1x8x4xf32> to vector<8x4xf32>
    %cst_11 = arith.constant dense<0.000000e+00> : vector<8x1024xf32>
    %16 = tpu.matmul %15, %13, %cst_11 {dimension_numbers = #tpu.dot_dimension_numbers<[1], [0], [0], [1], [0, 0, 1, 1], [], []>} : vector<8x4xf32>, vector<4x1024xf32>, vector<8x1024xf32> -> vector<8x1024xf32>
    %17 = arith.addf %12, %16 : vector<8x1024xf32>
    %c1008_i32 = arith.constant 1008 : i32
    %18 = tpu.dynamic_rotate %0 by %c1008_i32 dim 1 : vector<4x1024xf32>, i32 -> vector<4x1024xf32>
    %c3 = arith.constant 3 : index
    %c0_12 = arith.constant 0 : index
    %c0_13 = arith.constant 0 : index
    %19 = vector.load %arg2[%c3, %c0_12, %c0_13] : memref<9x8x4xf32, #tpu.memory_space<vmem>>, vector<1x8x4xf32>
    %20 = vector.shape_cast %19 : vector<1x8x4xf32> to vector<8x4xf32>
    %cst_14 = arith.constant dense<0.000000e+00> : vector<8x1024xf32>
    %21 = tpu.matmul %20, %18, %cst_14 {dimension_numbers = #tpu.dot_dimension_numbers<[1], [0], [0], [1], [0, 0, 1, 1], [], []>} : vector<8x4xf32>, vector<4x1024xf32>, vector<8x1024xf32> -> vector<8x1024xf32>
    %22 = arith.addf %17, %21 : vector<8x1024xf32>
    %c1007_i32 = arith.constant 1007 : i32
    %23 = tpu.dynamic_rotate %0 by %c1007_i32 dim 1 : vector<4x1024xf32>, i32 -> vector<4x1024xf32>
    %c4 = arith.constant 4 : index
    %c0_15 = arith.constant 0 : index
    %c0_16 = arith.constant 0 : index
    %24 = vector.load %arg2[%c4, %c0_15, %c0_16] : memref<9x8x4xf32, #tpu.memory_space<vmem>>, vector<1x8x4xf32>
    %25 = vector.shape_cast %24 : vector<1x8x4xf32> to vector<8x4xf32>
    %cst_17 = arith.constant dense<0.000000e+00> : vector<8x1024xf32>
    %26 = tpu.matmul %25, %23, %cst_17 {dimension_numbers = #tpu.dot_dimension_numbers<[1], [0], [0], [1], [0, 0, 1, 1], [], []>} : vector<8x4xf32>, vector<4x1024xf32>, vector<8x1024xf32> -> vector<8x1024xf32>
    %27 = arith.addf %22, %26 : vector<8x1024xf32>
    %c1006_i32 = arith.constant 1006 : i32
    %28 = tpu.dynamic_rotate %0 by %c1006_i32 dim 1 : vector<4x1024xf32>, i32 -> vector<4x1024xf32>
    %c5 = arith.constant 5 : index
    %c0_18 = arith.constant 0 : index
    %c0_19 = arith.constant 0 : index
    %29 = vector.load %arg2[%c5, %c0_18, %c0_19] : memref<9x8x4xf32, #tpu.memory_space<vmem>>, vector<1x8x4xf32>
    %30 = vector.shape_cast %29 : vector<1x8x4xf32> to vector<8x4xf32>
    %cst_20 = arith.constant dense<0.000000e+00> : vector<8x1024xf32>
    %31 = tpu.matmul %30, %28, %cst_20 {dimension_numbers = #tpu.dot_dimension_numbers<[1], [0], [0], [1], [0, 0, 1, 1], [], []>} : vector<8x4xf32>, vector<4x1024xf32>, vector<8x1024xf32> -> vector<8x1024xf32>
    %32 = arith.addf %27, %31 : vector<8x1024xf32>
    %c992_i32 = arith.constant 992 : i32
    %33 = tpu.dynamic_rotate %0 by %c992_i32 dim 1 : vector<4x1024xf32>, i32 -> vector<4x1024xf32>
    %c6 = arith.constant 6 : index
    %c0_21 = arith.constant 0 : index
    %c0_22 = arith.constant 0 : index
    %34 = vector.load %arg2[%c6, %c0_21, %c0_22] : memref<9x8x4xf32, #tpu.memory_space<vmem>>, vector<1x8x4xf32>
    %35 = vector.shape_cast %34 : vector<1x8x4xf32> to vector<8x4xf32>
    %cst_23 = arith.constant dense<0.000000e+00> : vector<8x1024xf32>
    %36 = tpu.matmul %35, %33, %cst_23 {dimension_numbers = #tpu.dot_dimension_numbers<[1], [0], [0], [1], [0, 0, 1, 1], [], []>} : vector<8x4xf32>, vector<4x1024xf32>, vector<8x1024xf32> -> vector<8x1024xf32>
    %37 = arith.addf %32, %36 : vector<8x1024xf32>
    %c991_i32 = arith.constant 991 : i32
    %38 = tpu.dynamic_rotate %0 by %c991_i32 dim 1 : vector<4x1024xf32>, i32 -> vector<4x1024xf32>
    %c7 = arith.constant 7 : index
    %c0_24 = arith.constant 0 : index
    %c0_25 = arith.constant 0 : index
    %39 = vector.load %arg2[%c7, %c0_24, %c0_25] : memref<9x8x4xf32, #tpu.memory_space<vmem>>, vector<1x8x4xf32>
    %40 = vector.shape_cast %39 : vector<1x8x4xf32> to vector<8x4xf32>
    %cst_26 = arith.constant dense<0.000000e+00> : vector<8x1024xf32>
    %41 = tpu.matmul %40, %38, %cst_26 {dimension_numbers = #tpu.dot_dimension_numbers<[1], [0], [0], [1], [0, 0, 1, 1], [], []>} : vector<8x4xf32>, vector<4x1024xf32>, vector<8x1024xf32> -> vector<8x1024xf32>
    %42 = arith.addf %37, %41 : vector<8x1024xf32>
    %c990_i32 = arith.constant 990 : i32
    %43 = tpu.dynamic_rotate %0 by %c990_i32 dim 1 : vector<4x1024xf32>, i32 -> vector<4x1024xf32>
    %c8 = arith.constant 8 : index
    %c0_27 = arith.constant 0 : index
    %c0_28 = arith.constant 0 : index
    %44 = vector.load %arg2[%c8, %c0_27, %c0_28] : memref<9x8x4xf32, #tpu.memory_space<vmem>>, vector<1x8x4xf32>
    %45 = vector.shape_cast %44 : vector<1x8x4xf32> to vector<8x4xf32>
    %cst_29 = arith.constant dense<0.000000e+00> : vector<8x1024xf32>
    %46 = tpu.matmul %45, %43, %cst_29 {dimension_numbers = #tpu.dot_dimension_numbers<[1], [0], [0], [1], [0, 0, 1, 1], [], []>} : vector<8x4xf32>, vector<4x1024xf32>, vector<8x1024xf32> -> vector<8x1024xf32>
    %47 = arith.addf %42, %46 : vector<8x1024xf32>
    %cst_30 = arith.constant 0.000000e+00 : f32
    %48 = vector.broadcast %cst_30 : f32 to vector<8x1024xf32>
    %49 = arith.maximumf %47, %48 : vector<8x1024xf32>
    %50 = vector.extract_strided_slice %49 {offsets = [0, 0], sizes = [8, 224], strides = [1, 1]} : vector<8x1024xf32> to vector<8x224xf32>
    %c0_31 = arith.constant 0 : index
    %c0_32 = arith.constant 0 : index
    %c0_33 = arith.constant 0 : index
    %51 = vector.load %arg4[%c0_31, %c0_32, %c0_33] : memref<4x8x224xf32, #tpu.memory_space<vmem>>, vector<1x8x224xf32>
    %52 = vector.shape_cast %51 : vector<1x8x224xf32> to vector<8x224xf32>
    %53 = vector.shape_cast %50 : vector<8x224xf32> to vector<1x8x224xf32>
    tpu.vector_store %arg4[%c0_31, %c0_32, %c0_33], %53 {strides = array<i32>} : memref<4x8x224xf32, #tpu.memory_space<vmem>>, vector<1x8x224xf32>,
    %54 = vector.extract_strided_slice %49 {offsets = [0, 256], sizes = [8, 224], strides = [1, 1]} : vector<8x1024xf32> to vector<8x224xf32>
    %c1_34 = arith.constant 1 : index
    %c0_35 = arith.constant 0 : index
    %c0_36 = arith.constant 0 : index
    %55 = vector.load %arg4[%c1_34, %c0_35, %c0_36] : memref<4x8x224xf32, #tpu.memory_space<vmem>>, vector<1x8x224xf32>
    %56 = vector.shape_cast %55 : vector<1x8x224xf32> to vector<8x224xf32>
    %57 = vector.shape_cast %54 : vector<8x224xf32> to vector<1x8x224xf32>
    tpu.vector_store %arg4[%c1_34, %c0_35, %c0_36], %57 {strides = array<i32>} : memref<4x8x224xf32, #tpu.memory_space<vmem>>, vector<1x8x224xf32>,
    %58 = vector.extract_strided_slice %49 {offsets = [0, 512], sizes = [8, 224], strides = [1, 1]} : vector<8x1024xf32> to vector<8x224xf32>
    %c2_37 = arith.constant 2 : index
    %c0_38 = arith.constant 0 : index
    %c0_39 = arith.constant 0 : index
    %59 = vector.load %arg4[%c2_37, %c0_38, %c0_39] : memref<4x8x224xf32, #tpu.memory_space<vmem>>, vector<1x8x224xf32>
    %60 = vector.shape_cast %59 : vector<1x8x224xf32> to vector<8x224xf32>
    %61 = vector.shape_cast %58 : vector<8x224xf32> to vector<1x8x224xf32>
    tpu.vector_store %arg4[%c2_37, %c0_38, %c0_39], %61 {strides = array<i32>} : memref<4x8x224xf32, #tpu.memory_space<vmem>>, vector<1x8x224xf32>,
    %62 = vector.extract_strided_slice %49 {offsets = [0, 768], sizes = [8, 224], strides = [1, 1]} : vector<8x1024xf32> to vector<8x224xf32>
    %c3_40 = arith.constant 3 : index
    %c0_41 = arith.constant 0 : index
    %c0_42 = arith.constant 0 : index
    %63 = vector.load %arg4[%c3_40, %c0_41, %c0_42] : memref<4x8x224xf32, #tpu.memory_space<vmem>>, vector<1x8x224xf32>
    %64 = vector.shape_cast %63 : vector<1x8x224xf32> to vector<8x224xf32>
    %65 = vector.shape_cast %62 : vector<8x224xf32> to vector<1x8x224xf32>
    tpu.vector_store %arg4[%c3_40, %c0_41, %c0_42], %65 {strides = array<i32>} : memref<4x8x224xf32, #tpu.memory_space<vmem>>, vector<1x8x224xf32>,
    return
  }
  func.func @transform_0(%arg0: i32) -> (i32, i32) {
    %c0_i32 = arith.constant 0 : i32
    %c0_i32_0 = arith.constant 0 : i32
    return %c0_i32, %arg0 : i32, i32
  }
  func.func @transform_1(%arg0: i32) -> (i32, i32, i32) {
    %c0_i32 = arith.constant 0 : i32
    %c0_i32_0 = arith.constant 0 : i32
    %c0_i32_1 = arith.constant 0 : i32
    %c0_i32_2 = arith.constant 0 : i32
    return %c0_i32, %c0_i32_0, %c0_i32_1 : i32, i32, i32
  }
  func.func @transform_2(%arg0: i32) -> (i32, i32) {
    %c0_i32 = arith.constant 0 : i32
    %c0_i32_0 = arith.constant 0 : i32
    %c0_i32_1 = arith.constant 0 : i32
    return %c0_i32, %c0_i32_0 : i32, i32
  }
  func.func @transform_3(%arg0: i32) -> (i32, i32, i32) {
    %c0_i32 = arith.constant 0 : i32
    %c0_i32_0 = arith.constant 0 : i32
    %c0_i32_1 = arith.constant 0 : i32
    return %arg0, %c0_i32, %c0_i32_0 : i32, i32, i32
  }
}

</mosaic_0001>

<bundles_post_ra>
// kernel: tpu_custom_call.1
= control target key start
LH: loop header
LB: loop body
LE: loop exit
PB: predicated region body
PF: predicated region fallthrough
CT: control target
= control target key end

     0   :  { %vm38_vm0 = vcmask 1043456   ;;  %v3313_v5 = vmov 0.0   ;;  %s3851_s0 = inlined_call_operand.vmem [shape: f32[4,1024], index: 0, kind: input, shape index: {}]   ;;  %s3852_s1 = inlined_call_operand.vmem [shape: f32[9,8,4], index: 1, kind: input, shape index: {}]   ;;  %s3853_s2 = inlined_call_operand.vmem [shape: f32[8,1], index: 2, kind: input, shape index: {}]   ;;  %s3854_s3 = inlined_call_operand.hbm [shape: f32[4,8,224], index: 3, kind: output, shape index: {}]  }
   0x1   :  { %v3349_v0 = vld [vmem:[%s3851_s0 + $0x8] sm:$0xff]  ;;  %v3354_v1 = vld [vmem:[%s3851_s0] sm:$0xff]  ;;  %v3367_v4 = vld [vmem:[%s3851_s0 + $0x18] sm:$0xff]  ;;  %190 = vmatprep.mubr.f32.mxu1 %v3313_v5  ;;  %119 = vmatprep.mubr.f32.mxu0 %v3313_v5 }
   0x2   :  { %v3358_v2 = vcombine.high %v3349_v0, %v3349_v0  ;;  %v3362_v3 = vcombine.high %v3354_v1, %v3354_v1 }
   0x3   :  { %8 = vsyncpa [#allocation3], 0  ;;  %s3314_s18 = smov 127   ;;  %v25_v6 = vld [vmem:[%s3852_s1] sm:$0xff]  ;;  %vm34_vm1 = vcmask 31744   ;;  %v3379_v7 = vld [vmem:[%s3851_s0 + $0x10] sm:$0xff]  ;;  %v3383_v8 = vcombine.high %v3367_v4, %v3367_v4  ;;  %v367_v10 = vlaneseq }
   0x4   :  { %357 = vrot.lane.b32.xlu1 %v3358_v2, %s3314_s18  ;;  %353 = vrot.lane.b32.xlu0 %v3362_v3, %s3314_s18  ;;  %v3395_v9 = vcombine.high %v3379_v7, %v3379_v7  ;;  %s3315_s0 = smov 126   ;;  %s3316_s23 = smov 112   ;;  %v3322_v14 = vmov 0   ;;  %v3169_v20 = vld [vmem:[%s3852_s1 + $0x8] sm:$0xff]  ;;  %v19_v30 = vld [vmem:[%s3853_s2] sm:$0xff]  ;;  %vm3130_vm10 = vcmask 785408  }
   0x5   :  { %3160 = vmatprep.subr.msk.mxu1 %vm38_vm0, %v3358_v2  ;;  %3157 = vmatprep.subr.msk.mxu0 %vm38_vm0, %v3362_v3  ;;  %s3317_s24 = smov 111   ;;  %s3318_s25 = smov 110   ;;  %v3469_v11 = vand.u32 127, %v367_v10  ;;  %v3182_v38 = vld [vmem:[%s3852_s1 + $0x10] sm:$0xff]  ;;  %v3195_v55 = vld [vmem:[%s3852_s1 + $0x18] sm:$0xff] }
   0x6   :  { %3161 = vmatpush1.msk.msra.mxu1 %vm38_vm0, %v3349_v0  ;;  %3158 = vmatpush1.msk.msra.mxu0 %vm38_vm0, %v3354_v1  ;;  %s3319_s26 = smov 96   ;;  %s3320_s27 = smov 95  }
   0x7   :  { %3162 = vmatmul.mubr.msk.f32.vlgmr.msra.gmra.mxu1 %vm34_vm1, %v25_v6  ;;  %3166 = vmatprep.subr.msk.mxu1 %vm38_vm0, %v3383_v8  ;;  %s3321_s28 = smov 94   ;;  %vm369_vm2 = vcmp.lt.s32.totalorder %v3469_v11, 127  ;;  %vm715_vm3 = vcmp.lt.s32.totalorder %v3469_v11, 126  ;;  %vm1061_vm4 = vcmp.lt.s32.totalorder %v3469_v11, 112  ;;  %vm1407_vm5 = vcmp.lt.s32.totalorder %v3469_v11, 111 }
   0x8   :  { %359 = vrot.lane.b32.xlu1 %v3379_v7, %s3314_s18  ;;  %355 = vrot.lane.b32.xlu0 %v3349_v0, %s3314_s18  ;;  %vm1753_vm6 = vcmp.lt.s32.totalorder %v3469_v11, 110  ;;  %vm2099_vm7 = vcmp.lt.s32.totalorder %v3469_v11, 96  ;;  %vm2445_vm8 = vcmp.lt.s32.totalorder %v3469_v11, 95  ;;  %vm2791_vm9 = vcmp.lt.s32.totalorder %v3469_v11, 94 }
   0x9   :  { %3163 = vmatprep.subr.msk.mxu0 %vm38_vm0, %v3395_v9  ;;  %3159 = vmatmul.mubr.msk.f32.vlgmr.msra.gmra.mxu0 %vm34_vm1, %v25_v6 }
   0xa   :  { %3164 = vmatpush1.msk.msra.mxu0 %vm38_vm0, %v3379_v7  ;;  %3167 = vmatpush1.msk.msra.mxu1 %vm38_vm0, %v3367_v4 }
   0xb   :  { %332 = vmatprep.mubr.f32.mxu1 %v3313_v5  ;;  %261 = vmatprep.mubr.f32.mxu0 %v3313_v5 }
   0xc   :  { %361 = vrot.lane.b32.xlu1 %v3395_v9, %s3314_s18  ;;  %351 = vrot.lane.b32.xlu0 %v3354_v1, %s3314_s18 }
   0xd   :  { %3168 = vmatmul.mubr.msk.f32.vlgmr.msra.gmra.mxu1 %vm34_vm1, %v25_v6  ;;  %3165 = vmatmul.mubr.msk.f32.vlgmr.msra.gmra.mxu0 %vm34_vm1, %v25_v6 }
   0xe   :  { %471 = vmatprep.mubr.f32.mxu0 %v3313_v5  ;;  %542 = vmatprep.mubr.f32.mxu1 %v3313_v5 }
   0xf   :  { %3286 = vset.pattern.permute.xlu0 %v3322_v14 }
  0x10   :  { %365 = vrot.lane.b32.xlu1 %v3383_v8, %s3314_s18  ;;  %363 = vrot.lane.b32.xlu0 %v3367_v4, %s3314_s18 }
  0x14   :  { %703 = vrot.lane.b32.xlu1 %v3349_v0, %s3315_s0  ;;  %701 = vrot.lane.b32.xlu0 %v3362_v3, %s3315_s0 }
  0x18   :  { %707 = vrot.lane.b32.xlu1 %v3379_v7, %s3315_s0  ;;  %705 = vrot.lane.b32.xlu0 %v3358_v2, %s3315_s0 }
  0x1c   :  { %709 = vrot.lane.b32.xlu1 %v3395_v9, %s3315_s0  ;;  %699 = vrot.lane.b32.xlu0 %v3354_v1, %s3315_s0 }
  0x20   :  { %713 = vrot.lane.b32.xlu1 %v3383_v8, %s3315_s0  ;;  %711 = vrot.lane.b32.xlu0 %v3367_v4, %s3315_s0 }
  0x24   :  { %1049 = vrot.lane.b32.xlu1 %v3349_v0, %s3316_s23  ;;  %1047 = vrot.lane.b32.xlu0 %v3362_v3, %s3316_s23 }
  0x28   :  { %1053 = vrot.lane.b32.xlu1 %v3379_v7, %s3316_s23  ;;  %1051 = vrot.lane.b32.xlu0 %v3358_v2, %s3316_s23 }
  0x2c   :  { %1055 = vrot.lane.b32.xlu1 %v3395_v9, %s3316_s23  ;;  %1045 = vrot.lane.b32.xlu0 %v3354_v1, %s3316_s23 }
  0x30   :  { %1059 = vrot.lane.b32.xlu1 %v3383_v8, %s3316_s23  ;;  %1057 = vrot.lane.b32.xlu0 %v3367_v4, %s3316_s23 }
  0x34   :  { %1395 = vrot.lane.b32.xlu1 %v3349_v0, %s3317_s24  ;;  %1393 = vrot.lane.b32.xlu0 %v3362_v3, %s3317_s24 }
  0x38   :  { %1399 = vrot.lane.b32.xlu1 %v3379_v7, %s3317_s24  ;;  %1397 = vrot.lane.b32.xlu0 %v3358_v2, %s3317_s24 }
  0x3c   :  { %1401 = vrot.lane.b32.xlu1 %v3395_v9, %s3317_s24  ;;  %1391 = vrot.lane.b32.xlu0 %v3354_v1, %s3317_s24 }
  0x40   :  { %1405 = vrot.lane.b32.xlu1 %v3383_v8, %s3317_s24  ;;  %1403 = vrot.lane.b32.xlu0 %v3367_v4, %s3317_s24 }
  0x44   :  { %1741 = vrot.lane.b32.xlu1 %v3349_v0, %s3318_s25  ;;  %1739 = vrot.lane.b32.xlu0 %v3362_v3, %s3318_s25 }
  0x48   :  { %1745 = vrot.lane.b32.xlu1 %v3379_v7, %s3318_s25  ;;  %1743 = vrot.lane.b32.xlu0 %v3358_v2, %s3318_s25 }
  0x4c   :  { %1747 = vrot.lane.b32.xlu1 %v3395_v9, %s3318_s25  ;;  %1737 = vrot.lane.b32.xlu0 %v3354_v1, %s3318_s25 }
  0x50   :  { %1751 = vrot.lane.b32.xlu1 %v3383_v8, %s3318_s25  ;;  %1749 = vrot.lane.b32.xlu0 %v3367_v4, %s3318_s25 }
  0x54   :  { %2087 = vrot.lane.b32.xlu1 %v3349_v0, %s3319_s26  ;;  %2085 = vrot.lane.b32.xlu0 %v3362_v3, %s3319_s26 }
  0x58   :  { %2091 = vrot.lane.b32.xlu1 %v3379_v7, %s3319_s26  ;;  %2089 = vrot.lane.b32.xlu0 %v3358_v2, %s3319_s26 }
  0x5c   :  { %2093 = vrot.lane.b32.xlu1 %v3395_v9, %s3319_s26  ;;  %2083 = vrot.lane.b32.xlu0 %v3354_v1, %s3319_s26 }
  0x60   :  { %2097 = vrot.lane.b32.xlu1 %v3383_v8, %s3319_s26  ;;  %2095 = vrot.lane.b32.xlu0 %v3367_v4, %s3319_s26 }
  0x64   :  { %2433 = vrot.lane.b32.xlu1 %v3349_v0, %s3320_s27  ;;  %2431 = vrot.lane.b32.xlu0 %v3362_v3, %s3320_s27 }
  0x68   :  { %2437 = vrot.lane.b32.xlu1 %v3379_v7, %s3320_s27  ;;  %2435 = vrot.lane.b32.xlu0 %v3358_v2, %s3320_s27 }
  0x6c   :  { %2439 = vrot.lane.b32.xlu1 %v3395_v9, %s3320_s27  ;;  %2429 = vrot.lane.b32.xlu0 %v3354_v1, %s3320_s27 }
  0x70   :  { %2443 = vrot.lane.b32.xlu1 %v3383_v8, %s3320_s27  ;;  %2441 = vrot.lane.b32.xlu0 %v3367_v4, %s3320_s27 }
  0x74   :  { %2779 = vrot.lane.b32.xlu1 %v3349_v0, %s3321_s28  ;;  %2777 = vrot.lane.b32.xlu0 %v3362_v3, %s3321_s28 }
  0x76   :  { %v358_v12 = vpop.permute.xlu1 %357  ;;  %v354_v13 = vpop.permute.xlu0 %353 }
  0x78   :  { %2783 = vrot.lane.b32.xlu1 %v3379_v7, %s3321_s28  ;;  %2781 = vrot.lane.b32.xlu0 %v3358_v2, %s3321_s28 }
  0x7a   :  { %v360_v15 = vpop.permute.xlu1 %359  ;;  %v356_v16 = vpop.permute.xlu0 %355 }
  0x7b   :  { %v373_v17 = vsel %vm369_vm2, %v358_v12, %v360_v15  ;;  %v374_v18 = vsel %vm369_vm2, %v356_v16, %v358_v12  ;;  %v375_v19 = vsel %vm369_vm2, %v354_v13, %v356_v16 }
  0x7c   :  { %2785 = vrot.lane.b32.xlu1 %v3395_v9, %s3321_s28  ;;  %3173 = vmatprep.subr.msk.mxu1 %vm38_vm0, %v373_v17  ;;  %v3208_v9 = vld [vmem:[%s3852_s1 + $0x20] sm:$0xff] }
  0x7d   :  { %2775 = vrot.lane.b32.xlu0 %v3354_v1, %s3321_s28  ;;  %3170 = vmatprep.subr.msk.mxu0 %vm38_vm0, %v375_v19 }
  0x7e   :  { %3174 = vmatpush1.msk.msra.mxu1 %vm38_vm0, %v374_v18  ;;  %v362_v21 = vpop.permute.xlu1 %361  ;;  %v352_v22 = vpop.permute.xlu0 %351 }
  0x7f   :  { %v376_v23 = vsel %vm369_vm2, %v352_v22, %v354_v13  ;;  %3175 = vmatmul.mubr.msk.f32.vlgmr.msra.gmra.mxu1 %vm34_vm1, %v3169_v20  ;;  %v372_v29 = vsel %vm369_vm2, %v360_v15, %v362_v21 }
  0x80   :  { %2789 = vrot.lane.b32.xlu1 %v3383_v8, %s3321_s28  ;;  %3171 = vmatpush1.msk.msra.mxu0 %vm38_vm0, %v376_v23 }
  0x81   :  { %2787 = vrot.lane.b32.xlu0 %v3367_v4, %s3321_s28  ;;  %3172 = vmatmul.mubr.msk.f32.vlgmr.msra.gmra.mxu0 %vm34_vm1, %v3169_v20 }
  0x82   :  { %v366_v24 = vpop.permute.xlu1 %365  ;;  %v364_v25 = vpop.permute.xlu0 %363  ;;  %684 = vmatprep.mubr.f32.mxu1 %v3313_v5  ;;  %613 = vmatprep.mubr.f32.mxu0 %v3313_v5 }
  0x83   :  { %v377_v26 = vsel %vm369_vm2, %v366_v24, %v352_v22  ;;  %v370_v27 = vsel %vm369_vm2, %v364_v25, %v366_v24  ;;  %v371_v28 = vsel %vm369_vm2, %v362_v21, %v364_v25 }
  0x84   :  { %3176 = vmatprep.subr.msk.mxu0 %vm38_vm0, %v371_v28  ;;  %3179 = vmatprep.subr.msk.mxu1 %vm38_vm0, %v377_v26 }
  0x85   :  { %3177 = vmatpush1.msk.msra.mxu0 %vm38_vm0, %v372_v29  ;;  %3180 = vmatpush1.msk.msra.mxu1 %vm38_vm0, %v370_v27  ;;  %v3221_v27 = vld [vmem:[%s3852_s1 + $0x28] sm:$0xff] }
  0x86   :  { %v704_v31 = vpop.permute.xlu1 %703  ;;  %v702_v32 = vpop.permute.xlu0 %701  ;;  %3181 = vmatmul.mubr.msk.f32.vlgmr.msra.gmra.mxu1 %vm34_vm1, %v3169_v20  ;;  %3178 = vmatmul.mubr.msk.f32.vlgmr.msra.gmra.mxu0 %vm34_vm1, %v3169_v20 }
  0x87   :  { %v721_v33 = vsel %vm715_vm3, %v702_v32, %v704_v31  ;;  %817 = vmatprep.mubr.f32.mxu0 %v3313_v5  ;;  %888 = vmatprep.mubr.f32.mxu1 %v3313_v5 }
  0x88   :  { %3183 = vmatprep.subr.msk.mxu0 %vm38_vm0, %v721_v33  ;;  %22 = vperm.xlu0 %3286, %v19_v30  }
  0x8a   :  { %v708_v34 = vpop.permute.xlu1 %707  ;;  %v706_v35 = vpop.permute.xlu0 %705 }
  0x8b   :  { %v719_v36 = vsel %vm715_vm3, %v706_v35, %v708_v34  ;;  %v720_v37 = vsel %vm715_vm3, %v704_v31, %v706_v35 }
  0x8c   :  { %3186 = vmatprep.subr.msk.mxu1 %vm38_vm0, %v719_v36 }
  0x8d   :  { %3187 = vmatpush1.msk.msra.mxu1 %vm38_vm0, %v720_v37 }
  0x8e   :  { %v710_v39 = vpop.permute.xlu1 %709  ;;  %v700_v40 = vpop.permute.xlu0 %699  ;;  %3188 = vmatmul.mubr.msk.f32.vlgmr.msra.gmra.mxu1 %vm34_vm1, %v3182_v38 }
  0x8f   :  { %v722_v41 = vsel %vm715_vm3, %v700_v40, %v702_v32  ;;  %1030 = vmatprep.mubr.f32.mxu1 %v3313_v5  ;;  %v718_v47 = vsel %vm715_vm3, %v708_v34, %v710_v39 }
  0x90   :  { %3184 = vmatpush1.msk.msra.mxu0 %vm38_vm0, %v722_v41 }
  0x91   :  { %3185 = vmatmul.mubr.msk.f32.vlgmr.msra.gmra.mxu0 %vm34_vm1, %v3182_v38 }
  0x92   :  { %v714_v42 = vpop.permute.xlu1 %713  ;;  %v712_v43 = vpop.permute.xlu0 %711  ;;  %959 = vmatprep.mubr.f32.mxu0 %v3313_v5 }
  0x93   :  { %v723_v44 = vsel %vm715_vm3, %v714_v42, %v700_v40  ;;  %v716_v45 = vsel %vm715_vm3, %v712_v43, %v714_v42  ;;  %v717_v46 = vsel %vm715_vm3, %v710_v39, %v712_v43 }
  0x94   :  { %3189 = vmatprep.subr.msk.mxu0 %vm38_vm0, %v717_v46  ;;  %3192 = vmatprep.subr.msk.mxu1 %vm38_vm0, %v723_v44  ;;  %v3234_v44 = vld [vmem:[%s3852_s1 + $0x30] sm:$0xff] }
  0x95   :  { %3190 = vmatpush1.msk.msra.mxu0 %vm38_vm0, %v718_v47  ;;  %3193 = vmatpush1.msk.msra.mxu1 %vm38_vm0, %v716_v45 }
  0x96   :  { %v1050_v48 = vpop.permute.xlu1 %1049  ;;  %v1048_v49 = vpop.permute.xlu0 %1047  ;;  %3194 = vmatmul.mubr.msk.f32.vlgmr.msra.gmra.mxu1 %vm34_vm1, %v3182_v38  ;;  %3191 = vmatmul.mubr.msk.f32.vlgmr.msra.gmra.mxu0 %vm34_vm1, %v3182_v38 }
  0x97   :  { %v1067_v50 = vsel %vm1061_vm4, %v1048_v49, %v1050_v48  ;;  %1163 = vmatprep.mubr.f32.mxu0 %v3313_v5  ;;  %1234 = vmatprep.mubr.f32.mxu1 %v3313_v5 }
  0x98   :  { %3196 = vmatprep.subr.msk.mxu0 %vm38_vm0, %v1067_v50 }
  0x9a   :  { %v1054_v51 = vpop.permute.xlu1 %1053  ;;  %v1052_v52 = vpop.permute.xlu0 %1051 }
  0x9b   :  { %v1065_v53 = vsel %vm1061_vm4, %v1052_v52, %v1054_v51  ;;  %v1066_v54 = vsel %vm1061_vm4, %v1050_v48, %v1052_v52 }
  0x9c   :  { %3199 = vmatprep.subr.msk.mxu1 %vm38_vm0, %v1065_v53 }
  0x9d   :  { %3200 = vmatpush1.msk.msra.mxu1 %vm38_vm0, %v1066_v54 }
  0x9e   :  { %v1056_v56 = vpop.permute.xlu1 %1055  ;;  %v1046_v57 = vpop.permute.xlu0 %1045  ;;  %3201 = vmatmul.mubr.msk.f32.vlgmr.msra.gmra.mxu1 %vm34_vm1, %v3195_v55 }
  0x9f   :  { %v1068_v58 = vsel %vm1061_vm4, %v1046_v57, %v1048_v49  ;;  %1376 = vmatprep.mubr.f32.mxu1 %v3313_v5  ;;  %v1064_v0 = vsel %vm1061_vm4, %v1054_v51, %v1056_v56 }
  0xa0   :  { %3197 = vmatpush1.msk.msra.mxu0 %vm38_vm0, %v1068_v58 }
  0xa1   :  { %3198 = vmatmul.mubr.msk.f32.vlgmr.msra.gmra.mxu0 %vm34_vm1, %v3195_v55 }
  0xa2   :  { %v1060_v59 = vpop.permute.xlu1 %1059  ;;  %v1058_v60 = vpop.permute.xlu0 %1057  ;;  %1305 = vmatprep.mubr.f32.mxu0 %v3313_v5 }
  0xa3   :  { %v1069_v61 = vsel %vm1061_vm4, %v1060_v59, %v1046_v57  ;;  %v1062_v62 = vsel %vm1061_vm4, %v1058_v60, %v1060_v59  ;;  %v1063_v63 = vsel %vm1061_vm4, %v1056_v56, %v1058_v60 }
  0xa4   :  { %3202 = vmatprep.subr.msk.mxu0 %vm38_vm0, %v1063_v63  ;;  %3205 = vmatprep.subr.msk.mxu1 %vm38_vm0, %v1069_v61  ;;  %v3247_v61 = vld [vmem:[%s3852_s1 + $0x38] sm:$0xff] }
  0xa5   :  { %3203 = vmatpush1.msk.msra.mxu0 %vm38_vm0, %v1064_v0  ;;  %3206 = vmatpush1.msk.msra.mxu1 %vm38_vm0, %v1062_v62 }
  0xa6   :  { %v1396_v1 = vpop.permute.xlu1 %1395  ;;  %v1394_v2 = vpop.permute.xlu0 %1393  ;;  %3207 = vmatmul.mubr.msk.f32.vlgmr.msra.gmra.mxu1 %vm34_vm1, %v3195_v55  ;;  %3204 = vmatmul.mubr.msk.f32.vlgmr.msra.gmra.mxu0 %vm34_vm1, %v3195_v55 }
  0xa7   :  { %v1413_v3 = vsel %vm1407_vm5, %v1394_v2, %v1396_v1  ;;  %1509 = vmatprep.mubr.f32.mxu0 %v3313_v5  ;;  %1580 = vmatprep.mubr.f32.mxu1 %v3313_v5 }
  0xa8   :  { %3209 = vmatprep.subr.msk.mxu0 %vm38_vm0, %v1413_v3 }
  0xaa   :  { %v1400_v4 = vpop.permute.xlu1 %1399  ;;  %v1398_v6 = vpop.permute.xlu0 %1397 }
  0xab   :  { %v1411_v7 = vsel %vm1407_vm5, %v1398_v6, %v1400_v4  ;;  %v1412_v8 = vsel %vm1407_vm5, %v1396_v1, %v1398_v6 }
  0xac   :  { %3212 = vmatprep.subr.msk.mxu1 %vm38_vm0, %v1411_v7 }
  0xad   :  { %3213 = vmatpush1.msk.msra.mxu1 %vm38_vm0, %v1412_v8 }
  0xae   :  { %v1402_v10 = vpop.permute.xlu1 %1401  ;;  %v1392_v12 = vpop.permute.xlu0 %1391  ;;  %3214 = vmatmul.mubr.msk.f32.vlgmr.msra.gmra.mxu1 %vm34_vm1, %v3208_v9 }
  0xaf   :  { %v1414_v13 = vsel %vm1407_vm5, %v1392_v12, %v1394_v2  ;;  %1722 = vmatprep.mubr.f32.mxu1 %v3313_v5  ;;  %v1410_v19 = vsel %vm1407_vm5, %v1400_v4, %v1402_v10 }
  0xb0   :  { %3210 = vmatpush1.msk.msra.mxu0 %vm38_vm0, %v1414_v13 }
  0xb1   :  { %3211 = vmatmul.mubr.msk.f32.vlgmr.msra.gmra.mxu0 %vm34_vm1, %v3208_v9 }
  0xb2   :  { %v1406_v14 = vpop.permute.xlu1 %1405  ;;  %v1404_v15 = vpop.permute.xlu0 %1403  ;;  %1651 = vmatprep.mubr.f32.mxu0 %v3313_v5 }
  0xb3   :  { %v1415_v16 = vsel %vm1407_vm5, %v1406_v14, %v1392_v12  ;;  %v1408_v17 = vsel %vm1407_vm5, %v1404_v15, %v1406_v14  ;;  %v1409_v18 = vsel %vm1407_vm5, %v1402_v10, %v1404_v15 }
  0xb4   :  { %3215 = vmatprep.subr.msk.mxu0 %vm38_vm0, %v1409_v18  ;;  %3218 = vmatprep.subr.msk.mxu1 %vm38_vm0, %v1415_v16  ;;  %v3260_v16 = vld [vmem:[%s3852_s1 + $0x40] sm:$0xff]  ;;  %s3323_s1 = smov [#allocation2]  }
  0xb5   :  { %3216 = vmatpush1.msk.msra.mxu0 %vm38_vm0, %v1410_v19  ;;  %3219 = vmatpush1.msk.msra.mxu1 %vm38_vm0, %v1408_v17  ;;  %s3146_s19 = sshll.u32 %s3323_s1, 4  ;;  %s3147_s19 = int_to_ptr.vmem [resolvable:$true] %s3146_s19 }
  0xb6   :  { %v1742_v20 = vpop.permute.xlu1 %1741  ;;  %v1740_v21 = vpop.permute.xlu0 %1739  ;;  %3220 = vmatmul.mubr.msk.f32.vlgmr.msra.gmra.mxu1 %vm34_vm1, %v3208_v9  ;;  %3217 = vmatmul.mubr.msk.f32.vlgmr.msra.gmra.mxu0 %vm34_vm1, %v3208_v9  ;;  %s3291_s20 = scalar_lea.vmem %s3147_s19, 1024  ;;  %p3296_p1 = scmp.lt.s32.totalorder %s3147_s19, %s3147_s19 }
  0xb7   :  { %v1759_v22 = vsel %vm1753_vm6, %v1740_v21, %v1742_v20  ;;  %1926 = vmatprep.mubr.f32.mxu1 %v3313_v5  ;;  %1855 = vmatprep.mubr.f32.mxu0 %v3313_v5  ;;  %p3292_p0 = scmp.ne.s32.totalorder %s3147_s19, %s3291_s20  ;;  %p3297_p2 = scmp.lt.s32.totalorder %s3291_s20, %s3291_s20 }
  0xb8   :  { %3222 = vmatprep.subr.msk.mxu0 %vm38_vm0, %v1759_v22 }
  0xb9   :  { %p3298_p3 = por %p3297_p2, %p3296_p1 }
  0xba   :  { %v1746_v23 = vpop.permute.xlu1 %1745  ;;  %v1744_v24 = vpop.permute.xlu0 %1743 }
  0xbb   :  { %v1757_v25 = vsel %vm1753_vm6, %v1744_v24, %v1746_v23  ;;  %v1758_v26 = vsel %vm1753_vm6, %v1742_v20, %v1744_v24  ;;  %p3299_p4 = pnand %p3298_p3, %p3292_p0 }
  0xbc   :  { %3225 = vmatprep.subr.msk.mxu1 %vm38_vm0, %v1757_v25 }
  0xbd   :  { %3226 = vmatpush1.msk.msra.mxu1 %vm38_vm0, %v1758_v26 }
  0xbe   :  { %v1748_v28 = vpop.permute.xlu1 %1747  ;;  %3227 = vmatmul.mubr.msk.f32.vlgmr.msra.gmra.mxu1 %vm34_vm1, %v3221_v27  ;;  %v1738_v29 = vpop.permute.xlu0 %1737 }
  0xbf   :  { %v1760_v30 = vsel %vm1753_vm6, %v1738_v29, %v1740_v21  ;;  %2068 = vmatprep.mubr.f32.mxu1 %v3313_v5  ;;  %v1756_v36 = vsel %vm1753_vm6, %v1746_v23, %v1748_v28 }
  0xc0   :  { %3223 = vmatpush1.msk.msra.mxu0 %vm38_vm0, %v1760_v30 }
  0xc1   :  { %3224 = vmatmul.mubr.msk.f32.vlgmr.msra.gmra.mxu0 %vm34_vm1, %v3221_v27 }
  0xc2   :  { %v1752_v31 = vpop.permute.xlu1 %1751  ;;  %v1750_v32 = vpop.permute.xlu0 %1749  ;;  %1997 = vmatprep.mubr.f32.mxu0 %v3313_v5 }
  0xc3   :  { %v1761_v33 = vsel %vm1753_vm6, %v1752_v31, %v1738_v29  ;;  %v1754_v34 = vsel %vm1753_vm6, %v1750_v32, %v1752_v31  ;;  %v1755_v35 = vsel %vm1753_vm6, %v1748_v28, %v1750_v32 }
  0xc4   :  { %3228 = vmatprep.subr.msk.mxu0 %vm38_vm0, %v1755_v35  ;;  %3231 = vmatprep.subr.msk.mxu1 %vm38_vm0, %v1761_v33 }
  0xc5   :  { %3229 = vmatpush1.msk.msra.mxu0 %vm38_vm0, %v1756_v36  ;;  %3232 = vmatpush1.msk.msra.mxu1 %vm38_vm0, %v1754_v34 }
  0xc6   :  { %v2088_v37 = vpop.permute.xlu1 %2087  ;;  %3233 = vmatmul.mubr.msk.f32.vlgmr.msra.gmra.mxu1 %vm34_vm1, %v3221_v27  ;;  %v2086_v38 = vpop.permute.xlu0 %2085  ;;  %3230 = vmatmul.mubr.msk.f32.vlgmr.msra.gmra.mxu0 %vm34_vm1, %v3221_v27 }
  0xc7   :  { %v2105_v39 = vsel %vm2099_vm7, %v2086_v38, %v2088_v37  ;;  %2272 = vmatprep.mubr.f32.mxu1 %v3313_v5  ;;  %2201 = vmatprep.mubr.f32.mxu0 %v3313_v5  ;;  %v192_v26 = vpop.f32.mrf.mxu1 }
  0xc8   :  { %3235 = vmatprep.subr.msk.mxu0 %vm38_vm0, %v2105_v39 }
  0xc9   :  { %v194_v28 = vpop.f32.mrf.mxu1 }
  0xca   :  { %v2092_v40 = vpop.permute.xlu1 %2091  ;;  %v2090_v41 = vpop.permute.xlu0 %2089 }
  0xcb   :  { %v2103_v42 = vsel %vm2099_vm7, %v2090_v41, %v2092_v40  ;;  %v2104_v43 = vsel %vm2099_vm7, %v2088_v37, %v2090_v41 }
  0xcc   :  { %3238 = vmatprep.subr.msk.mxu1 %vm38_vm0, %v2103_v42 }
  0xcd   :  { %3239 = vmatpush1.msk.msra.mxu1 %vm38_vm0, %v2104_v43  ;;  %v334_v30 = vpop.f32.mrf.mxu1 }
  0xce   :  { %v2094_v45 = vpop.permute.xlu1 %2093  ;;  %3240 = vmatmul.mubr.msk.f32.vlgmr.msra.gmra.mxu1 %vm34_vm1, %v3234_v44  ;;  %v2084_v46 = vpop.permute.xlu0 %2083 }
  0xcf   :  { %v2106_v47 = vsel %vm2099_vm7, %v2084_v46, %v2086_v38  ;;  %2414 = vmatprep.mubr.f32.mxu1 %v3313_v5  ;;  %v2102_v53 = vsel %vm2099_vm7, %v2092_v40, %v2094_v45  ;;  %v336_v11 = vpop.f32.mrf.mxu1 }
  0xd0   :  { %3236 = vmatpush1.msk.msra.mxu0 %vm38_vm0, %v2106_v47 }
  0xd1   :  { %3237 = vmatmul.mubr.msk.f32.vlgmr.msra.gmra.mxu0 %vm34_vm1, %v3234_v44 }
  0xd2   :  { %v2098_v48 = vpop.permute.xlu1 %2097  ;;  %v2096_v49 = vpop.permute.xlu0 %2095  ;;  %2343 = vmatprep.mubr.f32.mxu0 %v3313_v5 }
  0xd3   :  { %v2107_v50 = vsel %vm2099_vm7, %v2098_v48, %v2084_v46  ;;  %v2100_v51 = vsel %vm2099_vm7, %v2096_v49, %v2098_v48  ;;  %v2101_v52 = vsel %vm2099_vm7, %v2094_v45, %v2096_v49 }
  0xd4   :  { %3241 = vmatprep.subr.msk.mxu0 %vm38_vm0, %v2101_v52  ;;  %3244 = vmatprep.subr.msk.mxu1 %vm38_vm0, %v2107_v50 }
  0xd5   :  { %3242 = vmatpush1.msk.msra.mxu0 %vm38_vm0, %v2102_v53  ;;  %3245 = vmatpush1.msk.msra.mxu1 %vm38_vm0, %v2100_v51 }
  0xd6   :  { %v2434_v54 = vpop.permute.xlu1 %2433  ;;  %3246 = vmatmul.mubr.msk.f32.vlgmr.msra.gmra.mxu1 %vm34_vm1, %v3234_v44  ;;  %v2432_v55 = vpop.permute.xlu0 %2431  ;;  %3243 = vmatmul.mubr.msk.f32.vlgmr.msra.gmra.mxu0 %vm34_vm1, %v3234_v44 }
  0xd7   :  { %v2451_v56 = vsel %vm2445_vm8, %v2432_v55, %v2434_v54  ;;  %2618 = vmatprep.mubr.f32.mxu1 %v3313_v5  ;;  %2547 = vmatprep.mubr.f32.mxu0 %v3313_v5 }
  0xd8   :  { %3248 = vmatprep.subr.msk.mxu0 %vm38_vm0, %v2451_v56 }
  0xda   :  { %v2438_v57 = vpop.permute.xlu1 %2437  ;;  %v2436_v58 = vpop.permute.xlu0 %2435 }
  0xdb   :  { %v2449_v59 = vsel %vm2445_vm8, %v2436_v58, %v2438_v57  ;;  %v2450_v60 = vsel %vm2445_vm8, %v2434_v54, %v2436_v58 }
  0xdc   :  { %3251 = vmatprep.subr.msk.mxu1 %vm38_vm0, %v2449_v59 }
  0xdd   :  { %3252 = vmatpush1.msk.msra.mxu1 %vm38_vm0, %v2450_v60 }
  0xde   :  { %v2440_v62 = vpop.permute.xlu1 %2439  ;;  %3253 = vmatmul.mubr.msk.f32.vlgmr.msra.gmra.mxu1 %vm34_vm1, %v3247_v61  ;;  %v2430_v63 = vpop.permute.xlu0 %2429 }
  0xdf   :  { %v2452_v0 = vsel %vm2445_vm8, %v2430_v63, %v2432_v55  ;;  %2760 = vmatprep.mubr.f32.mxu1 %v3313_v5  ;;  %v2448_v7 = vsel %vm2445_vm8, %v2438_v57, %v2440_v62 }
  0xe0   :  { %3249 = vmatpush1.msk.msra.mxu0 %vm38_vm0, %v2452_v0 }
  0xe1   :  { %3250 = vmatmul.mubr.msk.f32.vlgmr.msra.gmra.mxu0 %vm34_vm1, %v3247_v61 }
  0xe2   :  { %v2444_v1 = vpop.permute.xlu1 %2443  ;;  %v2442_v2 = vpop.permute.xlu0 %2441  ;;  %2689 = vmatprep.mubr.f32.mxu0 %v3313_v5 }
  0xe3   :  { %v2453_v3 = vsel %vm2445_vm8, %v2444_v1, %v2430_v63  ;;  %v2446_v4 = vsel %vm2445_vm8, %v2442_v2, %v2444_v1  ;;  %v2447_v6 = vsel %vm2445_vm8, %v2440_v62, %v2442_v2 }
  0xe4   :  { %3254 = vmatprep.subr.msk.mxu0 %vm38_vm0, %v2447_v6  ;;  %3257 = vmatprep.subr.msk.mxu1 %vm38_vm0, %v2453_v3 }
  0xe5   :  { %3255 = vmatpush1.msk.msra.mxu0 %vm38_vm0, %v2448_v7  ;;  %3258 = vmatpush1.msk.msra.mxu1 %vm38_vm0, %v2446_v4 }
  0xe6   :  { %v2780_v8 = vpop.permute.xlu1 %2779  ;;  %3259 = vmatmul.mubr.msk.f32.vlgmr.msra.gmra.mxu1 %vm34_vm1, %v3247_v61  ;;  %v2778_v9 = vpop.permute.xlu0 %2777  ;;  %3256 = vmatmul.mubr.msk.f32.vlgmr.msra.gmra.mxu0 %vm34_vm1, %v3247_v61 }
  0xe7   :  { %v2797_v10 = vsel %vm2791_vm9, %v2778_v9, %v2780_v8  ;;  %2964 = vmatprep.mubr.f32.mxu1 %v3313_v5  ;;  %2893 = vmatprep.mubr.f32.mxu0 %v3313_v5 }
  0xe8   :  { %3261 = vmatprep.subr.msk.mxu0 %vm38_vm0, %v2797_v10 }
  0xea   :  { %v2784_v12 = vpop.permute.xlu1 %2783  ;;  %v2782_v13 = vpop.permute.xlu0 %2781 }
  0xeb   :  { %v2795_v14 = vsel %vm2791_vm9, %v2782_v13, %v2784_v12  ;;  %v2796_v15 = vsel %vm2791_vm9, %v2780_v8, %v2782_v13 }
  0xec   :  { %3264 = vmatprep.subr.msk.mxu1 %vm38_vm0, %v2795_v14 }
  0xed   :  { %3265 = vmatpush1.msk.msra.mxu1 %vm38_vm0, %v2796_v15 }
  0xee   :  { %v2786_v17 = vpop.permute.xlu1 %2785  ;;  %3266 = vmatmul.mubr.msk.f32.vlgmr.msra.gmra.mxu1 %vm34_vm1, %v3260_v16 }
  0xef   :  { %v2776_v18 = vpop.permute.xlu0 %2775  ;;  %3106 = vmatprep.mubr.f32.mxu1 %v3313_v5  ;;  %v2794_v25 = vsel %vm2791_vm9, %v2784_v12, %v2786_v17 }
  0xf0   :  { %v2798_v19 = vsel %vm2791_vm9, %v2776_v18, %v2778_v9 }
  0xf1   :  { %3262 = vmatpush1.msk.msra.mxu0 %vm38_vm0, %v2798_v19 }
  0xf2   :  { %3263 = vmatmul.mubr.msk.f32.vlgmr.msra.gmra.mxu0 %vm34_vm1, %v3260_v16  ;;  %v2790_v20 = vpop.permute.xlu1 %2789 }
  0xf3   :  { %v2799_v21 = vsel %vm2791_vm9, %v2790_v20, %v2776_v18  ;;  %v2788_v22 = vpop.permute.xlu0 %2787  ;;  %3035 = vmatprep.mubr.f32.mxu0 %v3313_v5  ;;  %v121_v5 = vpop.f32.mrf.mxu0 }
  0xf4   :  { %v2792_v23 = vsel %vm2791_vm9, %v2788_v22, %v2790_v20  ;;  %v2793_v24 = vsel %vm2791_vm9, %v2786_v17, %v2788_v22  ;;  %3270 = vmatprep.subr.msk.mxu1 %vm38_vm0, %v2799_v21 }
  0xf5   :  { %3267 = vmatprep.subr.msk.mxu0 %vm38_vm0, %v2793_v24  ;;  %3271 = vmatpush1.msk.msra.mxu1 %vm38_vm0, %v2792_v23  ;;  %v123_v27 = vpop.f32.mrf.mxu0 }
  0xf6   :  { %3268 = vmatpush1.msk.msra.mxu0 %vm38_vm0, %v2794_v25  ;;  %3272 = vmatmul.mubr.msk.f32.vlgmr.msra.gmra.mxu1 %vm34_vm1, %v3260_v16 }
  0xf7   :  { %3269 = vmatmul.mubr.msk.f32.vlgmr.msra.gmra.mxu0 %vm34_vm1, %v3260_v16  ;;  %v263_v29 = vpop.f32.mrf.mxu0 }
  0xf9   :  { %v3766_v31 = vpop.f32.mrf.mxu0 }
 0x103   :  { %v23_v7 = vpop.permute.xlu0 %22 }
 0x104   :  { %v341_v13 = vadd.f32 %v192_v26, %v23_v7  ;;  %v342_v14 = vadd.f32 %v194_v28, %v23_v7  ;;  %v339_v18 = vadd.f32 %v121_v5, %v23_v7  ;;  %v340_v21 = vadd.f32 %v123_v27, %v23_v7 }
 0x105   :  { %v345_v22 = vadd.f32 %v334_v30, %v23_v7 }
 0x13f   :  { %v544_v33 = vpop.f32.mrf.mxu1 }
 0x140   :  { %v693_v17 = vadd.f32 %v544_v33, %v341_v13 }
 0x141   :  { %v473_v32 = vpop.f32.mrf.mxu0  ;;  %v546_v35 = vpop.f32.mrf.mxu1 }
 0x142   :  { %v694_v20 = vadd.f32 %v546_v35, %v342_v14  ;;  %v691_v25 = vadd.f32 %v473_v32, %v339_v18 }
 0x143   :  { %v475_v34 = vpop.f32.mrf.mxu0 }
 0x144   :  { %v692_v28 = vadd.f32 %v475_v34, %v340_v21 }
 0x146   :  { %v3768_v36 = vpop.f32.mrf.mxu0  ;;  %v686_v37 = vpop.f32.mrf.mxu1 }
 0x148   :  { %v3770_v38 = vpop.f32.mrf.mxu0  ;;  %v688_v39 = vpop.f32.mrf.mxu1 }
 0x14e   :  { %v890_v41 = vpop.f32.mrf.mxu1 }
 0x14f   :  { %v1039_v24 = vadd.f32 %v890_v41, %v693_v17 }
 0x150   :  { %v892_v43 = vpop.f32.mrf.mxu1 }
 0x151   :  { %v819_v40 = vpop.f32.mrf.mxu0  ;;  %v1040_v26 = vadd.f32 %v892_v43, %v694_v20 }
 0x152   :  { %v1037_v35 = vadd.f32 %v819_v40, %v691_v25 }
 0x153   :  { %v821_v42 = vpop.f32.mrf.mxu0 }
 0x154   :  { %v1038_v32 = vadd.f32 %v821_v42, %v692_v28 }
 0x156   :  { %v3772_v44 = vpop.f32.mrf.mxu0  ;;  %v1032_v45 = vpop.f32.mrf.mxu1 }
 0x158   :  { %v3774_v46 = vpop.f32.mrf.mxu0  ;;  %v3776_v47 = vpop.f32.mrf.mxu1 }
 0x15e   :  { %v1236_v49 = vpop.f32.mrf.mxu1 }
 0x15f   :  { %v1385_v13 = vadd.f32 %v1236_v49, %v1039_v24 }
 0x160   :  { %v1238_v51 = vpop.f32.mrf.mxu1 }
 0x161   :  { %v1165_v48 = vpop.f32.mrf.mxu0  ;;  %v1386_v41 = vadd.f32 %v1238_v51, %v1040_v26 }
 0x162   :  { %v1383_v34 = vadd.f32 %v1165_v48, %v1037_v35 }
 0x163   :  { %v3778_v50 = vpop.f32.mrf.mxu0 }
 0x164   :  { %v1384_v40 = vadd.f32 %v3778_v50, %v1038_v32 }
 0x166   :  { %v3780_v52 = vpop.f32.mrf.mxu0  ;;  %v3782_v53 = vpop.f32.mrf.mxu1 }
 0x168   :  { %v3784_v54 = vpop.f32.mrf.mxu0  ;;  %v3786_v55 = vpop.f32.mrf.mxu1 }
 0x16e   :  { %v1582_v57 = vpop.f32.mrf.mxu1 }
 0x16f   :  { %v1731_v43 = vadd.f32 %v1582_v57, %v1385_v13 }
 0x170   :  { %v1584_v59 = vpop.f32.mrf.mxu1 }
 0x171   :  { %v1511_v56 = vpop.f32.mrf.mxu0  ;;  %v1732_v49 = vadd.f32 %v1584_v59, %v1386_v41 }
 0x172   :  { %v1729_v51 = vadd.f32 %v1511_v56, %v1383_v34 }
 0x173   :  { %v3788_v58 = vpop.f32.mrf.mxu0 }
 0x176   :  { %v3790_v60 = vpop.f32.mrf.mxu0  ;;  %v3792_v61 = vpop.f32.mrf.mxu1 }
 0x178   :  { %v3794_v62 = vpop.f32.mrf.mxu0  ;;  %v3796_v63 = vpop.f32.mrf.mxu1 }
 0x179   :  { %3855 = vst [vmem:[#allocation5_spill] sm:$0xff] %v3794_v62  ;;  %v344_v62 = vadd.f32 %v3766_v31, %v23_v7 }
 0x17e   :  { %v1928_v1 = vpop.f32.mrf.mxu1 }
 0x180   :  { %v1930_v3 = vpop.f32.mrf.mxu1 }
 0x181   :  { %v1857_v0 = vpop.f32.mrf.mxu0 }
 0x183   :  { %v3798_v2 = vpop.f32.mrf.mxu0 }
 0x186   :  { %v3800_v4 = vpop.f32.mrf.mxu0  ;;  %v3802_v6 = vpop.f32.mrf.mxu1 }
 0x187   :  { %3856 = vst [vmem:[#allocation6_spill] sm:$0xff] %v3800_v4 }
 0x188   :  { %v3804_v8 = vpop.f32.mrf.mxu0  ;;  %v3806_v9 = vpop.f32.mrf.mxu1 }
 0x189   :  { %3857 = vst [vmem:[#allocation7_spill] sm:$0xff] %v3804_v8  ;;  %3858 = vst [vmem:[#allocation8_spill] sm:$0xff] %v3806_v9  ;;  %v343_v8 = vadd.f32 %v263_v29, %v23_v7  ;;  %v346_v9 = vadd.f32 %v336_v11, %v23_v7  ;;  %v696_v29 = vadd.f32 %v3770_v38, %v344_v62 }
 0x18a   :  { %v2078_v38 = vadd.f32 %v1930_v3, %v1732_v49 }
 0x18b   :  { %v695_v27 = vadd.f32 %v3768_v36, %v343_v8  ;;  %v698_v30 = vadd.f32 %v688_v39, %v346_v9  ;;  %v2077_v36 = vadd.f32 %v1928_v1, %v1731_v43  ;;  %v1042_v39 = vadd.f32 %v3774_v46, %v696_v29 }
 0x18c   :  { %v2075_v8 = vadd.f32 %v1857_v0, %v1729_v51 }
 0x18d   :  { %v1041_v31 = vadd.f32 %v3772_v44, %v695_v27  ;;  %v1388_v50 = vadd.f32 %v3784_v54, %v1042_v39 }
 0x18e   :  { %v2274_v10 = vpop.f32.mrf.mxu1  ;;  %v3862_v25 = vld [vmem:[#allocation6_spill] sm:$0xff] }
 0x18f   :  { %v1387_v57 = vadd.f32 %v3780_v52, %v1041_v31 }
 0x190   :  { %v2276_v15 = vpop.f32.mrf.mxu1  ;;  %v3864_v13 = vld [vmem:[#allocation7_spill] sm:$0xff] }
 0x191   :  { %v2203_v12 = vpop.f32.mrf.mxu0  ;;  %v2424_v59 = vadd.f32 %v2276_v15, %v2078_v38 }
 0x192   :  { %v2421_v56 = vadd.f32 %v2203_v12, %v2075_v8  ;;  %v3863_v12 = vld [vmem:[#allocation8_spill] sm:$0xff] }
 0x193   :  { %v3808_v16 = vpop.f32.mrf.mxu0 }
 0x194   :  { %3859 = vst [vmem:[#allocation9_spill] sm:$0xff] %v3808_v16  ;;  %v697_v16 = vadd.f32 %v686_v37, %v345_v22  ;;  %v1044_v37 = vadd.f32 %v3776_v47, %v698_v30  ;;  %v1730_v47 = vadd.f32 %v3788_v58, %v1384_v40 }
 0x196   :  { %v3810_v19 = vpop.f32.mrf.mxu1  ;;  %v3812_v23 = vpop.f32.mrf.mxu0  ;;  %v1043_v11 = vadd.f32 %v1032_v45, %v697_v16  ;;  %v2423_v45 = vadd.f32 %v2274_v10, %v2077_v36  ;;  %v1390_v48 = vadd.f32 %v3786_v55, %v1044_v37  ;;  %v1733_v55 = vadd.f32 %v3790_v60, %v1387_v57 }
 0x198   :  { %v3814_v4 = vpop.f32.mrf.mxu1  ;;  %v3817_v33 = vpop.f32.mrf.mxu0  ;;  %v1389_v42 = vadd.f32 %v3782_v53, %v1043_v11  ;;  %v2076_v53 = vadd.f32 %v3798_v2, %v1730_v47  ;;  %v1736_v52 = vadd.f32 %v3796_v63, %v1390_v48  ;;  %v2079_v2 = vadd.f32 %v3862_v25, %v1733_v55 }
 0x19a   :  { %v1735_v46 = vadd.f32 %v3792_v61, %v1389_v42  ;;  %v3861_v61 = vld [vmem:[#allocation5_spill] sm:$0xff]  ;;  %v2082_v26 = vadd.f32 %v3863_v12, %v1736_v52  ;;  %v2425_v27 = vadd.f32 %v3812_v23, %v2079_v2 }
 0x19b   :  { %v3860_v15 = vld [vmem:[#allocation9_spill] sm:$0xff]  ;;  %v1734_v24 = vadd.f32 %v3861_v61, %v1388_v50 }
 0x19c   :  { %v2081_v16 = vadd.f32 %v3802_v6, %v1735_v46  ;;  %v2422_v20 = vadd.f32 %v3860_v15, %v2076_v53 }
 0x19d   :  { %v2080_v35 = vadd.f32 %v3864_v13, %v1734_v24 }
 0x19e   :  { %v2620_v5 = vpop.f32.mrf.mxu1  ;;  %v2427_v63 = vadd.f32 %v3810_v19, %v2081_v16 }
 0x19f   :  { %v2769_v9 = vadd.f32 %v2620_v5, %v2423_v45  ;;  %v2426_v11 = vadd.f32 %v3817_v33, %v2080_v35 }
 0x1a0   :  { %v2622_v17 = vpop.f32.mrf.mxu1 }
 0x1a1   :  { %v2549_v14 = vpop.f32.mrf.mxu0  ;;  %v2770_v3 = vadd.f32 %v2622_v17, %v2424_v59 }
 0x1a2   :  { %v2767_v21 = vadd.f32 %v2549_v14, %v2421_v56  ;;  %v2428_v14 = vadd.f32 %v3814_v4, %v2082_v26 }
 0x1a3   :  { %v2551_v7 = vpop.f32.mrf.mxu0 }
 0x1a4   :  { %v2768_v60 = vadd.f32 %v2551_v7, %v2422_v20 }
 0x1a6   :  { %v2762_v18 = vpop.f32.mrf.mxu1  ;;  %v2691_v44 = vpop.f32.mrf.mxu0 }
 0x1a7   :  { %v2773_v41 = vadd.f32 %v2762_v18, %v2427_v63  ;;  %v2771_v17 = vadd.f32 %v2691_v44, %v2425_v27 }
 0x1a8   :  { %v2764_v62 = vpop.f32.mrf.mxu1  ;;  %v2693_v58 = vpop.f32.mrf.mxu0 }
 0x1a9   :  { %v2774_v43 = vadd.f32 %v2764_v62, %v2428_v14  ;;  %v2772_v7 = vadd.f32 %v2693_v58, %v2426_v11 }
 0x1ae   :  { %v2966_v1 = vpop.f32.mrf.mxu1 }
 0x1af   :  { %v3115_v10 = vadd.f32 %v2966_v1, %v2769_v9 }
 0x1b0   :  { %v2968_v0 = vpop.f32.mrf.mxu1 }
 0x1b1   :  { %v3123_v54 = vmax.f32 %v3115_v10, 0.0  ;;  %v3116_v22 = vadd.f32 %v2968_v0, %v2770_v3 }
 0x1b2   :  { %v2895_v28 = vpop.f32.mrf.mxu0 }
 0x1b3   :  { %3133 = vst [vmem:[#allocation2 + $0x10] sm:$0xff] %v3123_v54  ;;  %v3124_v6 = vmax.f32 %v3116_v22, 0.0  ;;  %v3113_v5 = vadd.f32 %v2895_v28, %v2767_v21 }
 0x1b4   :  { %v2897_v30 = vpop.f32.mrf.mxu0 }
 0x1b5   :  { %3134 = vst.msk [vmem:[#allocation2 + $0x18] sm:$0xff] %vm3130_vm10, %v3124_v6  ;;  %v3121_v32 = vmax.f32 %v3113_v5, 0.0  ;;  %v3114_v29 = vadd.f32 %v2897_v30, %v2768_v60 }
 0x1b6   :  { %v3108_v19 = vpop.f32.mrf.mxu1 }
 0x1b7   :  { %3129 = vst [vmem:[#allocation2] sm:$0xff] %v3121_v32  ;;  %v3122_v34 = vmax.f32 %v3114_v29, 0.0  ;;  %v3037_v31 = vpop.f32.mrf.mxu0  ;;  %v3119_v37 = vadd.f32 %v3108_v19, %v2773_v41 }
 0x1b8   :  { %v3117_v49 = vadd.f32 %v3037_v31, %v2771_v17  ;;  %v3110_v23 = vpop.f32.mrf.mxu1 }
 0x1b9   :  { %3131 = vst.msk [vmem:[#allocation2 + $0x8] sm:$0xff] %vm3130_vm10, %v3122_v34  ;;  %v3127_v4 = vmax.f32 %v3119_v37, 0.0  ;;  %v3039_v18 = vpop.f32.mrf.mxu0  ;;  %v3120_v40 = vadd.f32 %v3110_v23, %v2774_v43 }
 0x1ba   :  { %v3125_v36 = vmax.f32 %v3117_v49, 0.0  ;;  %v3118_v39 = vadd.f32 %v3039_v18, %v2772_v7 }
 0x1bb   :  { %3139 = vst [vmem:[#allocation2 + $0x30] sm:$0xff] %v3127_v4  ;;  %v3128_v33 = vmax.f32 %v3120_v40, 0.0 }
 0x1bc   :  { %3136 = vst [vmem:[#allocation2 + $0x20] sm:$0xff] %v3125_v36  ;;  %v3126_v42 = vmax.f32 %v3118_v39, 0.0 }
 0x1bd   :  { %3140 = vst.msk [vmem:[#allocation2 + $0x38] sm:$0xff] %vm3130_vm10, %v3128_v33 }
 0x1be   :  { %3137 = vst.msk [vmem:[#allocation2 + $0x28] sm:$0xff] %vm3130_vm10, %v3126_v42 }
 0x1bf   :  { %3302 = shalt.err (!%p3299_p4)
}
 0x1c0   :  { %s3324_s21 = smov 256   ;;  %s3325_s22 = smov 16  }
 0x1c1   :  { %3152 = dma.vmem_to_hbm [thread:$0]  %s3147_s19, 1024, %s3854_s3, [#allocation3], %s3324_s21, %s3324_s21, %s3325_s22  }
 0x1c2   :  { %3311 = dma.done.wait [#allocation3], 1024  }
 0x1c3   :  { %3312 = vsyncadd [#allocation3], 4294966272 }
 0x1c4   :  { %3156 = vsyncpa [#allocation3], 1 }

</bundles_post_ra>
